<compile_context>
chip_gen: v6e
topology: v6e:2x2x1
jax: 0.10.0
libtpu: 0.0.40
codegen_flags: <defaults>
</compile_context>

<pallas_src>
import math
from functools import partial

import jax
import jax.numpy as jnp
from jax import lax
from jax.experimental import pallas as pl
from jax.experimental.pallas import tpu as pltpu


# ---------------------------------------------------------------------------
# Tiling helpers
# ---------------------------------------------------------------------------

def _largest_legal_tile(seq_len, max_tile):
    """Largest divisor t of seq_len with t <= max_tile and (t % 8 == 0 or t == seq_len)."""
    if seq_len <= max_tile:
        return seq_len
    for t in range(max_tile, 0, -1):
        if seq_len % t == 0 and (t % 8 == 0 or t == seq_len):
            return t
    return seq_len


def _pick_heads_per_step(num_heads, d_k, target_lanes=256):
    """heads_per_step must divide num_heads and give a lane-legal group width
    (hs*d_k % 128 == 0, or hs == num_heads so the slice equals the full dim).
    Prefer the smallest hs whose group width reaches `target_lanes` (MXU width)."""
    divisors = [h for h in range(1, num_heads + 1) if num_heads % h == 0]
    legal = [h for h in divisors if (h * d_k) % 128 == 0 or h == num_heads]
    if not legal:
        return num_heads
    wide = [h for h in legal if h * d_k >= target_lanes]
    return min(wide) if wide else max(legal)


def _vmem_cap_bytes():
    """~75% of physical VMEM for this generation (48 MiB on v7x, 96 MiB on v5e/v6e)."""
    try:
        info = pltpu.get_tpu_info()
        cap = getattr(info, "vmem_capacity_bytes", None) or (128 << 20)
    except Exception:
        cap = 128 << 20
    return (int(cap) * 3) // 4


# ---------------------------------------------------------------------------
# Stage 1: QKV projection kernel  (full-D-wide matmuls, no per-head narrowness)
# ---------------------------------------------------------------------------

def _qkv_proj_kernel(xq_ref, xk_ref, xv_ref,
                     wq_ref, wk_ref, wv_ref,
                     bq_ref, bk_ref, bv_ref,
                     q_ref, k_ref, v_ref,
                     *, inv_sqrt_dk, mxu_dtype):
    # x*_ref: (1, p_tile, D)   w*_ref: (D, D) (= W^T)   b*_ref: (1, D) f32
    # outputs: (1, p_tile, D) in mxu_dtype
    def proj(x_ref, w_ref, b_ref):
        return (jnp.dot(x_ref[0].astype(mxu_dtype), w_ref[...].astype(mxu_dtype),
                        preferred_element_type=jnp.float32)
                + b_ref[...])

    q = proj(xq_ref, wq_ref, bq_ref) * inv_sqrt_dk   # fold 1/sqrt(d_k) once
    k = proj(xk_ref, wk_ref, bk_ref)
    v = proj(xv_ref, wv_ref, bv_ref)

    q_ref[0] = q.astype(q_ref.dtype)
    k_ref[0] = k.astype(k_ref.dtype)
    v_ref[0] = v.astype(v_ref.dtype)


# ---------------------------------------------------------------------------
# Stage 2: attention + fused output projection (per head-group)
# ---------------------------------------------------------------------------

def _attention_kernel(q_ref, k_ref, v_ref, wo_ref, bo_ref,
                      out_ref, *rest,
                      heads_per_step, d_k, mxu_dtype, store_weights):
    # q_ref:  (1, q_tile, hs*d_k)     k_ref/v_ref: (1, S, hs*d_k)
    # wo_ref: (hs*d_k, D)  (rows = concat-head dim of Wo^T)   bo_ref: (1, D) f32
    # out_ref: (1, q_tile, D)   [attn_ref: (1, hs, q_tile, S)]   acc_ref: (q_tile, D) f32
    if store_weights:
        attn_ref, acc_ref = rest
    else:
        (acc_ref,) = rest

    g = pl.program_id(2)

    @pl.when(g == 0)
    def _():
        acc_ref[...] = jnp.broadcast_to(bo_ref[...], acc_ref.shape).astype(jnp.float32)

    # Static unrolled loop over the heads of this group; all slices are static
    # ref windows (zero-cost views), scores/weights are lane-dense (q_tile, S).
    for hh in range(heads_per_step):
        sl = slice(hh * d_k, (hh + 1) * d_k)
        q_h = q_ref[0, :, sl]                         # (q_tile, d_k), pre-scaled
        k_h = k_ref[0, :, sl]                         # (S, d_k)
        v_h = v_ref[0, :, sl]                         # (S, d_k)

        # Q K^T with no explicit transpose (contract last dims).
        scores = lax.dot_general(
            q_h.astype(mxu_dtype), k_h.astype(mxu_dtype),
            dimension_numbers=(((1,), (1,)), ((), ())),
            preferred_element_type=jnp.float32)       # (q_tile, S)

        # TODO(synk): optional attention mask (mask=None path implemented) and
        # training-mode dropout on the weights (eval mode -> identity).
        m = jnp.max(scores, axis=-1, keepdims=True)
        e = jnp.exp(scores - m)
        denom = jnp.sum(e, axis=-1, keepdims=True)
        w = e * pl.reciprocal(denom, approx=True)     # (q_tile, S)

        if store_weights:
            attn_ref[0, hh] = w.astype(attn_ref.dtype)

        ctx = jnp.dot(w.astype(mxu_dtype), v_h.astype(mxu_dtype),
                      preferred_element_type=jnp.float32)        # (q_tile, d_k)

        wo_h = wo_ref[sl, :]                          # (d_k, D)
        acc_ref[...] += jnp.dot(ctx.astype(mxu_dtype), wo_h,
                                preferred_element_type=jnp.float32)

    @pl.when(g == pl.num_programs(2) - 1)
    def _():
        out_ref[0] = acc_ref[...].astype(out_ref.dtype)


# ---------------------------------------------------------------------------
# Wrapper
# ---------------------------------------------------------------------------

def multi_head_attention(query, key, value, params, num_heads, *,
                         q_tile=None, proj_tile=None, heads_per_step=None,
                         mxu_dtype=jnp.bfloat16, return_weights=True,
                         attn_dtype=jnp.float32):
    """query/key/value: [B, S, D]; params: PyTorch-layout weights/biases.

    Returns (output [B, S, D], attention_weights [B, H, S, S] or None).
    Eval-mode semantics: dropout identity, mask=None.
      mxu_dtype:   MXU operand / inter-stage dtype (f32 accumulation). Default
                   bf16 (v5e/v6e/v7x MXU peak); pass jnp.float32 for parity.
      return_weights / attn_dtype: control the [B,H,S,S] writeback (the HBM
                   roofline term) -- skip it or store bf16 when possible.
    """
    B, S, D = query.shape
    assert key.shape == (B, S, D) and value.shape == (B, S, D)
    assert D % num_heads == 0
    d_k = D // num_heads
    out_dtype = query.dtype
    cdt = jnp.dtype(mxu_dtype) if mxu_dtype is not None else jnp.dtype(jnp.float32)
    attn_dt = jnp.dtype(attn_dtype)

    # --- head grouping (lane-aligned group width, target >= 256 lanes) -------
    if heads_per_step is None:
        heads_per_step = _pick_heads_per_step(num_heads, d_k)
    hs = heads_per_step
    assert num_heads % hs == 0
    group_w = hs * d_k
    assert group_w % 128 == 0 or group_w == D, (
        "heads_per_step * d_k must be a multiple of 128 (or equal d_model)")
    G = num_heads // hs

    # --- host-side weight prep (PyTorch Linear: y = x @ W^T + b) -------------
    wqT = jnp.asarray(params["wq"]).T.astype(cdt)          # (D, D)
    wkT = jnp.asarray(params["wk"]).T.astype(cdt)
    wvT = jnp.asarray(params["wv"]).T.astype(cdt)
    woT = jnp.asarray(params["wo"]).T.astype(cdt)          # (D, D): rows = concat-head dim
    bq = jnp.asarray(params["bq"]).reshape(1, D).astype(jnp.float32)
    bk = jnp.asarray(params["bk"]).reshape(1, D).astype(jnp.float32)
    bv = jnp.asarray(params["bv"]).reshape(1, D).astype(jnp.float32)
    bo = jnp.asarray(params["bo"]).reshape(1, D).astype(jnp.float32)

    vmem_cap = _vmem_cap_bytes()
    in_bytes = jnp.dtype(query.dtype).itemsize
    cdt_bytes = cdt.itemsize
    out_bytes = jnp.dtype(out_dtype).itemsize
    attn_bytes = attn_dt.itemsize

    # ======================== stage 1: QKV projection ========================
    if proj_tile is None:
        proj_tile = _largest_legal_tile(S, 256)
    assert S % proj_tile == 0 and (proj_tile % 8 == 0 or proj_tile == S)

    est1 = (2 * 3 * proj_tile * D * in_bytes          # xq/xk/xv blocks (double-buffered)
            + 2 * 3 * D * D * cdt_bytes               # W^T blocks
            + 2 * 3 * D * 4                           # biases
            + 2 * 3 * proj_tile * D * cdt_bytes       # Q/K/V output blocks
            + 3 * proj_tile * D * 4                   # f32 matmul results
            + (2 << 20))
    vmem1 = int(min(vmem_cap, max(est1, 32 << 20)))

    proj_kernel = partial(_qkv_proj_kernel,
                          inv_sqrt_dk=1.0 / math.sqrt(d_k), mxu_dtype=cdt)

    qp, kp, vp = pl.pallas_call(
        proj_kernel,
        out_shape=tuple(jax.ShapeDtypeStruct((B, S, D), cdt) for _ in range(3)),
        grid_spec=pltpu.PrefetchScalarGridSpec(
            num_scalar_prefetch=0,
            grid=(B, S // proj_tile),
            in_specs=[
                pl.BlockSpec((1, proj_tile, D), lambda b, i: (b, i, 0)),
                pl.BlockSpec((1, proj_tile, D), lambda b, i: (b, i, 0)),
                pl.BlockSpec((1, proj_tile, D), lambda b, i: (b, i, 0)),
                pl.BlockSpec((D, D), lambda b, i: (0, 0)),
                pl.BlockSpec((D, D), lambda b, i: (0, 0)),
                pl.BlockSpec((D, D), lambda b, i: (0, 0)),
                pl.BlockSpec((1, D), lambda b, i: (0, 0)),
                pl.BlockSpec((1, D), lambda b, i: (0, 0)),
                pl.BlockSpec((1, D), lambda b, i: (0, 0)),
            ],
            out_specs=[
                pl.BlockSpec((1, proj_tile, D), lambda b, i: (b, i, 0)),
                pl.BlockSpec((1, proj_tile, D), lambda b, i: (b, i, 0)),
                pl.BlockSpec((1, proj_tile, D), lambda b, i: (b, i, 0)),
            ]),
        compiler_params=pltpu.CompilerParams(
            dimension_semantics=("parallel", "parallel"),
            vmem_limit_bytes=vmem1),
    )(query, key, value, wqT, wkT, wvT, bq, bk, bv)

    # ================== stage 2: attention + output projection ===============
    def _est2(qt):
        est = 0
        est += 2 * qt * group_w * cdt_bytes            # Q group block
        est += 2 * 2 * S * group_w * cdt_bytes         # K + V group blocks
        est += 2 * group_w * D * cdt_bytes             # Wo^T group block
        est += 2 * D * 4                               # bo
        est += 2 * qt * D * out_bytes                  # out block
        if return_weights:
            est += 2 * hs * qt * S * attn_bytes        # attn block (hs heads)
        est += qt * D * 4                              # f32 accumulator scratch
        # softmax / matmul intermediates (scores, exp, weights, ctx, head loads)
        est += 4 * qt * S * 4 + (qt + 2 * S) * d_k * 4 + qt * D * 4
        return est + (2 << 20)

    if q_tile is None:
        max_t = 256
        q_tile = _largest_legal_tile(S, max_t)
        while _est2(q_tile) > vmem_cap and max_t > 8:   # auto-shrink for v7x 64 MiB
            max_t //= 2
            nt = _largest_legal_tile(S, max_t)
            if nt == q_tile:
                break
            q_tile = nt
    assert S % q_tile == 0 and (q_tile % 8 == 0 or q_tile == S)
    vmem2 = int(min(vmem_cap, max(_est2(q_tile), 32 << 20)))

    attn_kernel = partial(_attention_kernel,
                          heads_per_step=hs, d_k=d_k, mxu_dtype=cdt,
                          store_weights=return_weights)

    in_specs = [
        pl.BlockSpec((1, q_tile, group_w), lambda b, i, g: (b, i, g)),   # Q group
        pl.BlockSpec((1, S, group_w),      lambda b, i, g: (b, 0, g)),   # K group
        pl.BlockSpec((1, S, group_w),      lambda b, i, g: (b, 0, g)),   # V group
        pl.BlockSpec((group_w, D),         lambda b, i, g: (g, 0)),      # Wo^T group
        pl.BlockSpec((1, D),               lambda b, i, g: (0, 0)),      # bo
    ]
    out_spec_out = pl.BlockSpec((1, q_tile, D), lambda b, i, g: (b, i, 0))
    if return_weights:
        out_shape = (jax.ShapeDtypeStruct((B, S, D), out_dtype),
                     jax.ShapeDtypeStruct((B, num_heads, S, S), attn_dt))
        out_specs = [out_spec_out,
                     pl.BlockSpec((1, hs, q_tile, S), lambda b, i, g: (b, g, i, 0))]
    else:
        out_shape = jax.ShapeDtypeStruct((B, S, D), out_dtype)
        out_specs = out_spec_out

    result = pl.pallas_call(
        attn_kernel,
        out_shape=out_shape,
        grid_spec=pltpu.PrefetchScalarGridSpec(
            num_scalar_prefetch=0,
            grid=(B, S // q_tile, G),
            in_specs=in_specs,
            out_specs=out_specs,
            scratch_shapes=[pltpu.VMEM((q_tile, D), jnp.float32)]),
        compiler_params=pltpu.CompilerParams(
            dimension_semantics=("parallel", "parallel", "arbitrary"),
            vmem_limit_bytes=vmem2),
    )(qp, kp, vp, woT, bo)

    # TODO(synk): for very long S, stream K/V flash-style over a kv-tile grid
    # axis (online softmax) and write attention-weight slabs per kv tile.
    if return_weights:
        out, attn = result
        return out, attn
    return result, None


# ---------------------------------------------------------------------------
# Pure-JAX reference (mirrors the PyTorch forward: eval mode, mask=None)
# ---------------------------------------------------------------------------

def _reference(query, key, value, params, num_heads):
    B, S, D = query.shape
    d_k = D // num_heads

    def lin(x, w, b):
        return x @ w.T + b

    Q = lin(query, params["wq"], params["bq"])
    K = lin(key, params["wk"], params["bk"])
    V = lin(value, params["wv"], params["bv"])

    def split(x):
        return x.reshape(B, S, num_heads, d_k).transpose(0, 2, 1, 3)

    Qh, Kh, Vh = split(Q), split(K), split(V)
    scores = jnp.einsum("bhqd,bhkd->bhqk", Qh, Kh) / math.sqrt(d_k)
    w = jax.nn.softmax(scores, axis=-1)
    ctx = jnp.einsum("bhqk,bhkd->bhqd", w, Vh)
    ctx = ctx.transpose(0, 2, 1, 3).reshape(B, S, D)
    out = ctx @ params["wo"].T + params["bo"]
    return out, w


# ---------------------------------------------------------------------------
# Self-test
# ---------------------------------------------------------------------------

if __name__ == "__main__":
    # Small shapes: batch=2, seq=8, d_model=32, heads=4 (d_k=8).
    B, S, D, H = 2, 8, 32, 4
    init_std = 0.02

    root = jax.random.PRNGKey(0)
    k_q, k_k, k_v, k_wq, k_wk, k_wv, k_wo = jax.random.split(root, 7)

    query = jax.random.normal(k_q, (B, S, D), dtype=jnp.float32)
    key_in = jax.random.normal(k_k, (B, S, D), dtype=jnp.float32)
    value = jax.random.normal(k_v, (B, S, D), dtype=jnp.float32)

    # Deterministic "init_weights": Normal(0, 0.02) weights, zero biases.
    params = {
        "wq": jax.random.normal(k_wq, (D, D), dtype=jnp.float32) * init_std,
        "wk": jax.random.normal(k_wk, (D, D), dtype=jnp.float32) * init_std,
        "wv": jax.random.normal(k_wv, (D, D), dtype=jnp.float32) * init_std,
        "wo": jax.random.normal(k_wo, (D, D), dtype=jnp.float32) * init_std,
        "bq": jnp.zeros((D,), jnp.float32),
        "bk": jnp.zeros((D,), jnp.float32),
        "bv": jnp.zeros((D,), jnp.float32),
        "bo": jnp.zeros((D,), jnp.float32),
    }

    ref_out, ref_attn = _reference(query, key_in, value, params, H)

    # 1) Full-precision path (f32 MXU operands, f32 attention weights).
    out, attn = multi_head_attention(query, key_in, value, params, H,
                                     mxu_dtype=jnp.float32,
                                     return_weights=True,
                                     attn_dtype=jnp.float32)
    out = jax.block_until_ready(out)
    attn = jax.block_until_ready(attn)
    assert out.shape == (B, S, D)
    assert attn.shape == (B, H, S, S)
    assert jnp.allclose(out, ref_out, atol=2e-3, rtol=2e-3)
    assert jnp.allclose(attn, ref_attn, atol=2e-3, rtol=2e-3)

    # 2) Default fast path: bf16 MXU operands + bf16 attention-weights store.
    out_bf, attn_bf = multi_head_attention(query, key_in, value, params, H,
                                           attn_dtype=jnp.bfloat16)
    out_bf = jax.block_until_ready(out_bf)
    attn_bf = jax.block_until_ready(attn_bf)
    assert jnp.allclose(out_bf, ref_out, atol=3e-2, rtol=3e-2)
    assert jnp.allclose(attn_bf.astype(jnp.float32), ref_attn, atol=3e-2, rtol=3e-2)

    # 3) No attention-weights writeback at all (fastest path).
    out_nw, attn_nw = multi_head_attention(query, key_in, value, params, H,
                                           return_weights=False)
    out_nw = jax.block_until_ready(out_nw)
    assert attn_nw is None
    assert jnp.allclose(out_nw, ref_out, atol=3e-2, rtol=3e-2)

    print("KERNEL_OK")
</pallas_src>

<mosaic_0001>
module attributes {stable_mosaic.version = 11 : i64} {
  func.func @_qkv_proj_kernel(%arg0: i32, %arg1: i32, %arg2: memref<1x8x32xf32, #tpu.memory_space<vmem>>, %arg3: memref<1x8x32xf32, #tpu.memory_space<vmem>>, %arg4: memref<1x8x32xf32, #tpu.memory_space<vmem>>, %arg5: memref<32x32xf32, #tpu.memory_space<vmem>>, %arg6: memref<32x32xf32, #tpu.memory_space<vmem>>, %arg7: memref<32x32xf32, #tpu.memory_space<vmem>>, %arg8: memref<1x32xf32, #tpu.memory_space<vmem>>, %arg9: memref<1x32xf32, #tpu.memory_space<vmem>>, %arg10: memref<1x32xf32, #tpu.memory_space<vmem>>, %arg11: memref<1x8x32xf32, #tpu.memory_space<vmem>>, %arg12: memref<1x8x32xf32, #tpu.memory_space<vmem>>, %arg13: memref<1x8x32xf32, #tpu.memory_space<vmem>>) attributes {dimension_semantics = [#tpu.dimension_semantics<parallel>, #tpu.dimension_semantics<parallel>], iteration_bounds = array<i64: 2, 1>, scalar_prefetch = 0 : i64, scratch_operands = 0 : i64, tpu.core_type = #tpu.core_type<tc>, window_params = [{transform_indices = @transform_0, window_bounds = array<i64: 1, 8, 32>}, {transform_indices = @transform_1, window_bounds = array<i64: 1, 8, 32>}, {transform_indices = @transform_2, window_bounds = array<i64: 1, 8, 32>}, {pipeline_mode = #tpu.pipeline_mode<synchronous>, transform_indices = @transform_3, window_bounds = array<i64: 32, 32>}, {pipeline_mode = #tpu.pipeline_mode<synchronous>, transform_indices = @transform_4, window_bounds = array<i64: 32, 32>}, {pipeline_mode = #tpu.pipeline_mode<synchronous>, transform_indices = @transform_5, window_bounds = array<i64: 32, 32>}, {pipeline_mode = #tpu.pipeline_mode<synchronous>, transform_indices = @transform_6, window_bounds = array<i64: 1, 32>}, {pipeline_mode = #tpu.pipeline_mode<synchronous>, transform_indices = @transform_7, window_bounds = array<i64: 1, 32>}, {pipeline_mode = #tpu.pipeline_mode<synchronous>, transform_indices = @transform_8, window_bounds = array<i64: 1, 32>}, {transform_indices = @transform_9, window_bounds = array<i64: 1, 8, 32>}, {transform_indices = @transform_10, window_bounds = array<i64: 1, 8, 32>}, {transform_indices = @transform_11, window_bounds = array<i64: 1, 8, 32>}]} {
    %c0 = arith.constant 0 : index
    %c0_0 = arith.constant 0 : index
    %c0_1 = arith.constant 0 : index
    %0 = vector.load %arg2[%c0, %c0_0, %c0_1] : memref<1x8x32xf32, #tpu.memory_space<vmem>>, vector<1x8x32xf32>
    %1 = vector.shape_cast %0 : vector<1x8x32xf32> to vector<8x32xf32>
    %c0_2 = arith.constant 0 : index
    %c0_3 = arith.constant 0 : index
    %2 = vector.load %arg5[%c0_2, %c0_3] : memref<32x32xf32, #tpu.memory_space<vmem>>, vector<32x32xf32>
    %cst = arith.constant dense<0.000000e+00> : vector<8x32xf32>
    %3 = tpu.matmul %1, %2, %cst {dimension_numbers = #tpu.dot_dimension_numbers<[1], [0], [0], [1], [0, 0, 1, 1], [], []>} : vector<8x32xf32>, vector<32x32xf32>, vector<8x32xf32> -> vector<8x32xf32>
    %c0_4 = arith.constant 0 : index
    %c0_5 = arith.constant 0 : index
    %4 = vector.load %arg8[%c0_4, %c0_5] : memref<1x32xf32, #tpu.memory_space<vmem>>, vector<1x32xf32>
    %5 = vector.broadcast %4 : vector<1x32xf32> to vector<8x32xf32>
    %6 = arith.addf %3, %5 : vector<8x32xf32>
    %cst_6 = arith.constant 0.353553385 : f32
    %7 = vector.broadcast %cst_6 : f32 to vector<8x32xf32>
    %8 = arith.mulf %6, %7 : vector<8x32xf32>
    %c0_7 = arith.constant 0 : index
    %c0_8 = arith.constant 0 : index
    %c0_9 = arith.constant 0 : index
    %9 = vector.load %arg3[%c0_7, %c0_8, %c0_9] : memref<1x8x32xf32, #tpu.memory_space<vmem>>, vector<1x8x32xf32>
    %10 = vector.shape_cast %9 : vector<1x8x32xf32> to vector<8x32xf32>
    %c0_10 = arith.constant 0 : index
    %c0_11 = arith.constant 0 : index
    %11 = vector.load %arg6[%c0_10, %c0_11] : memref<32x32xf32, #tpu.memory_space<vmem>>, vector<32x32xf32>
    %cst_12 = arith.constant dense<0.000000e+00> : vector<8x32xf32>
    %12 = tpu.matmul %10, %11, %cst_12 {dimension_numbers = #tpu.dot_dimension_numbers<[1], [0], [0], [1], [0, 0, 1, 1], [], []>} : vector<8x32xf32>, vector<32x32xf32>, vector<8x32xf32> -> vector<8x32xf32>
    %c0_13 = arith.constant 0 : index
    %c0_14 = arith.constant 0 : index
    %13 = vector.load %arg9[%c0_13, %c0_14] : memref<1x32xf32, #tpu.memory_space<vmem>>, vector<1x32xf32>
    %14 = vector.broadcast %13 : vector<1x32xf32> to vector<8x32xf32>
    %15 = arith.addf %12, %14 : vector<8x32xf32>
    %c0_15 = arith.constant 0 : index
    %c0_16 = arith.constant 0 : index
    %c0_17 = arith.constant 0 : index
    %16 = vector.load %arg4[%c0_15, %c0_16, %c0_17] : memref<1x8x32xf32, #tpu.memory_space<vmem>>, vector<1x8x32xf32>
    %17 = vector.shape_cast %16 : vector<1x8x32xf32> to vector<8x32xf32>
    %c0_18 = arith.constant 0 : index
    %c0_19 = arith.constant 0 : index
    %18 = vector.load %arg7[%c0_18, %c0_19] : memref<32x32xf32, #tpu.memory_space<vmem>>, vector<32x32xf32>
    %cst_20 = arith.constant dense<0.000000e+00> : vector<8x32xf32>
    %19 = tpu.matmul %17, %18, %cst_20 {dimension_numbers = #tpu.dot_dimension_numbers<[1], [0], [0], [1], [0, 0, 1, 1], [], []>} : vector<8x32xf32>, vector<32x32xf32>, vector<8x32xf32> -> vector<8x32xf32>
    %c0_21 = arith.constant 0 : index
    %c0_22 = arith.constant 0 : index
    %20 = vector.load %arg10[%c0_21, %c0_22] : memref<1x32xf32, #tpu.memory_space<vmem>>, vector<1x32xf32>
    %21 = vector.broadcast %20 : vector<1x32xf32> to vector<8x32xf32>
    %22 = arith.addf %19, %21 : vector<8x32xf32>
    %c0_23 = arith.constant 0 : index
    %c0_24 = arith.constant 0 : index
    %c0_25 = arith.constant 0 : index
    %23 = vector.load %arg11[%c0_23, %c0_24, %c0_25] : memref<1x8x32xf32, #tpu.memory_space<vmem>>, vector<1x8x32xf32>
    %24 = vector.shape_cast %23 : vector<1x8x32xf32> to vector<8x32xf32>
    %25 = vector.shape_cast %8 : vector<8x32xf32> to vector<1x8x32xf32>
    tpu.vector_store %arg11[%c0_23, %c0_24, %c0_25], %25 {strides = array<i32>} : memref<1x8x32xf32, #tpu.memory_space<vmem>>, vector<1x8x32xf32>,
    %c0_26 = arith.constant 0 : index
    %c0_27 = arith.constant 0 : index
    %c0_28 = arith.constant 0 : index
    %26 = vector.load %arg12[%c0_26, %c0_27, %c0_28] : memref<1x8x32xf32, #tpu.memory_space<vmem>>, vector<1x8x32xf32>
    %27 = vector.shape_cast %26 : vector<1x8x32xf32> to vector<8x32xf32>
    %28 = vector.shape_cast %15 : vector<8x32xf32> to vector<1x8x32xf32>
    tpu.vector_store %arg12[%c0_26, %c0_27, %c0_28], %28 {strides = array<i32>} : memref<1x8x32xf32, #tpu.memory_space<vmem>>, vector<1x8x32xf32>,
    %c0_29 = arith.constant 0 : index
    %c0_30 = arith.constant 0 : index
    %c0_31 = arith.constant 0 : index
    %29 = vector.load %arg13[%c0_29, %c0_30, %c0_31] : memref<1x8x32xf32, #tpu.memory_space<vmem>>, vector<1x8x32xf32>
    %30 = vector.shape_cast %29 : vector<1x8x32xf32> to vector<8x32xf32>
    %31 = vector.shape_cast %22 : vector<8x32xf32> to vector<1x8x32xf32>
    tpu.vector_store %arg13[%c0_29, %c0_30, %c0_31], %31 {strides = array<i32>} : memref<1x8x32xf32, #tpu.memory_space<vmem>>, vector<1x8x32xf32>,
    return
  }
  func.func @transform_0(%arg0: i32, %arg1: i32) -> (i32, i32, i32) {
    %c0_i32 = arith.constant 0 : i32
    %c0_i32_0 = arith.constant 0 : i32
    return %arg0, %arg1, %c0_i32 : i32, i32, i32
  }
  func.func @transform_1(%arg0: i32, %arg1: i32) -> (i32, i32, i32) {
    %c0_i32 = arith.constant 0 : i32
    %c0_i32_0 = arith.constant 0 : i32
    return %arg0, %arg1, %c0_i32 : i32, i32, i32
  }
  func.func @transform_2(%arg0: i32, %arg1: i32) -> (i32, i32, i32) {
    %c0_i32 = arith.constant 0 : i32
    %c0_i32_0 = arith.constant 0 : i32
    return %arg0, %arg1, %c0_i32 : i32, i32, i32
  }
  func.func @transform_3(%arg0: i32, %arg1: i32) -> (i32, i32) {
    %c0_i32 = arith.constant 0 : i32
    %c0_i32_0 = arith.constant 0 : i32
    %c0_i32_1 = arith.constant 0 : i32
    return %c0_i32, %c0_i32_0 : i32, i32
  }
  func.func @transform_4(%arg0: i32, %arg1: i32) -> (i32, i32) {
    %c0_i32 = arith.constant 0 : i32
    %c0_i32_0 = arith.constant 0 : i32
    %c0_i32_1 = arith.constant 0 : i32
    return %c0_i32, %c0_i32_0 : i32, i32
  }
  func.func @transform_5(%arg0: i32, %arg1: i32) -> (i32, i32) {
    %c0_i32 = arith.constant 0 : i32
    %c0_i32_0 = arith.constant 0 : i32
    %c0_i32_1 = arith.constant 0 : i32
    return %c0_i32, %c0_i32_0 : i32, i32
  }
  func.func @transform_6(%arg0: i32, %arg1: i32) -> (i32, i32) {
    %c0_i32 = arith.constant 0 : i32
    %c0_i32_0 = arith.constant 0 : i32
    %c0_i32_1 = arith.constant 0 : i32
    return %c0_i32, %c0_i32_0 : i32, i32
  }
  func.func @transform_7(%arg0: i32, %arg1: i32) -> (i32, i32) {
    %c0_i32 = arith.constant 0 : i32
    %c0_i32_0 = arith.constant 0 : i32
    %c0_i32_1 = arith.constant 0 : i32
    return %c0_i32, %c0_i32_0 : i32, i32
  }
  func.func @transform_8(%arg0: i32, %arg1: i32) -> (i32, i32) {
    %c0_i32 = arith.constant 0 : i32
    %c0_i32_0 = arith.constant 0 : i32
    %c0_i32_1 = arith.constant 0 : i32
    return %c0_i32, %c0_i32_0 : i32, i32
  }
  func.func @transform_9(%arg0: i32, %arg1: i32) -> (i32, i32, i32) {
    %c0_i32 = arith.constant 0 : i32
    %c0_i32_0 = arith.constant 0 : i32
    return %arg0, %arg1, %c0_i32 : i32, i32, i32
  }
  func.func @transform_10(%arg0: i32, %arg1: i32) -> (i32, i32, i32) {
    %c0_i32 = arith.constant 0 : i32
    %c0_i32_0 = arith.constant 0 : i32
    return %arg0, %arg1, %c0_i32 : i32, i32, i32
  }
  func.func @transform_11(%arg0: i32, %arg1: i32) -> (i32, i32, i32) {
    %c0_i32 = arith.constant 0 : i32
    %c0_i32_0 = arith.constant 0 : i32
    return %arg0, %arg1, %c0_i32 : i32, i32, i32
  }
}

</mosaic_0001>

<bundles_post_ra>
// kernel: tpu_custom_call.1
= control target key start
LH: loop header
LB: loop body
LE: loop exit
PB: predicated region body
PF: predicated region fallthrough
CT: control target
= control target key end

     0   :  { %s2021_s0 = inlined_call_operand.hbm [shape: f32[2,8,32], index: 0, kind: input, shape index: {}]   ;;  %s2022_s1 = inlined_call_operand.hbm [shape: f32[2,8,32], index: 1, kind: input, shape index: {}]   ;;  %s2023_s2 = inlined_call_operand.hbm [shape: f32[2,8,32], index: 2, kind: input, shape index: {}]   ;;  %s2024_s3 = inlined_call_operand.hbm [shape: f32[32,32], index: 3, kind: input, shape index: {}]   ;;  %s2025_s4 = inlined_call_operand.hbm [shape: f32[32,32], index: 4, kind: input, shape index: {}]   ;;  %s2026_s5 = inlined_call_operand.hbm [shape: f32[32,32], index: 5, kind: input, shape index: {}]   ;;  %s2027_s6 = inlined_call_operand.vmem [shape: f32[1,32], index: 6, kind: input, shape index: {}]   ;;  %s2028_s7 = inlined_call_operand.vmem [shape: f32[1,32], index: 7, kind: input, shape index: {}]   ;;  %s2029_s8 = inlined_call_operand.vmem [shape: f32[1,32], index: 8, kind: input, shape index: {}]   ;;  %s2030_s9 = inlined_call_operand.hbm [shape: f32[2,8,32], index: 9, kind: output, shape index: {0}]   ;;  %s2031_s10 = inlined_call_operand.hbm [shape: f32[2,8,32], index: 10, kind: output, shape index: {1}]   ;;  %s2032_s11 = inlined_call_operand.hbm [shape: f32[2,8,32], index: 11, kind: output, shape index: {2}]  }
   0x1   :  { %2053 = sst [smem:[#allocation29_spill]] %s2022_s1 }
   0x2   :  { %2054 = sst [smem:[#allocation30_spill]] %s2024_s3 }
   0x3   :  { %2055 = sst [smem:[#allocation31_spill]] %s2025_s4 }
   0x4   :  { %2056 = sst [smem:[#allocation32_spill]] %s2029_s8 }
   0x5   :  { %2057 = sst [smem:[#allocation33_spill]] %s2030_s9 }
   0x6   :  { %2058 = sst [smem:[#allocation34_spill]] %s2032_s11 }
   0x7   :  { %17 = vsyncpa [#allocation3], 0 }
   0x8   :  { %19 = vsyncpa [#allocation3 + $0x1], 0 }
   0x9   :  { %20 = vsyncpa [#allocation6], 0 }
   0xa   :  { %22 = vsyncpa [#allocation6 + $0x1], 0 }
   0xb   :  { %23 = vsyncpa [#allocation9], 0 }
   0xc   :  { %24 = vsyncpa [#allocation12], 0 }
   0xd   :  { %25 = vsyncpa [#allocation4], 0 }
   0xe   :  { %27 = vsyncpa [#allocation4 + $0x1], 0 }
   0xf   :  { %28 = vsyncpa [#allocation15], 0 }
  0x10   :  { %30 = vsyncpa [#allocation15 + $0x1], 0  ;;  %s1679_s17 = smov 0   ;;  %s1681_s18 = smov 0  }
  0x11   :  { %s1683_s19 = smov 0   ;;  %s1685_s20 = smov 0  }
  0x12   :  { %s1687_s21 = smov 0   ;;  %s1689_s22 = smov 0  }
  0x13 LB: > { %2059 = sst [smem:[#allocation23_spill]] %s1584_s17  ;;  %s1710_s23 = sadd.s32 4294967295, %s1604_s22   ;;  %s1604_s22 = sphi %s1689_s22, %s36_s22   ;;  %s1600_s21 = sphi %s1687_s21, %s2101_s21   ;;  %s1596_s20 = sphi %s1685_s20, %s2100_s20   ;;  %s1592_s19 = sphi %s1683_s19, %s2104_s19   ;;  %s1588_s18 = sphi %s1681_s18, %s2103_s18   ;;  %s1584_s17 = sphi %s1679_s17, %s2102_s17  }
  0x14   : > { %2060 = sst [smem:[#allocation24_spill]] %s1600_s21  ;;  %s2033_s24 = sadd.s32 4294967294, %s1604_s22  }
  0x15   : > { %2061 = sst [smem:[#allocation25_spill]] %s1604_s22  ;;  %p70_p0 = scmp.ne.s32.totalorder %s1588_s18, %s1584_s17 }
  0x16   : > { %p2047_p1 = scmp.eq.s32.totalorder %s1710_s23, 0  ;;  %p284_p3 = scmp.eq.s32.totalorder %s2033_s24, 1 }
  0x17   : > { %p1094_p5 = scmp.ge.s32.totalorder %s1604_s22, 1  ;;  %p347_p7 = scmp.lt.s32.totalorder %s1604_s22, 3 }
  0x18   : > { %p1721_p4 = por %p2047_p1, %p70_p0  ;;  %p1726_p6 = por %p284_p3, %p70_p0 }
  0x19   : > { %p1731_p8 = pnand %p1094_p5, %p347_p7  ;;  %s1606_s28 = smov [#allocation8]  }
  0x1a   : > { %s2062_s25 = scalar_select %p1721_p4, 1, 0 }
  0x1b   : > { %s2063_s26 = scalar_select %p1726_p6, 1, 0 }
  0x1c   : > { %s2065_s27 = scalar_select %p1731_p8, 1, 0 }
  0x1d   : > { %2064 = sst [smem:[#allocation26_spill]] %s2063_s26  ;;  %s359_s29 = sshll.u32 %s1606_s28, 4  ;;  %s360_s29 = int_to_ptr.vmem [resolvable:$true] %s359_s29 }
  0x1e   : > { %p1201_p9 = pneg %p1731_p8  ;;  %s48_s12 = sadd.s32 1, %s1600_s21 }
  0x1f   : > { %s1305_s13 = scalar_lea.vmem %s360_s29, 512  ;;  %p1313_p5 = scmp.lt.s32.totalorder %s360_s29, %s360_s29 }
  0x20   : > { %p1740_p11 = pnand %p1201_p9, %p2047_p1  ;;  %p1306_p13 = scmp.ne.s32.totalorder %s360_s29, %s1305_s13 }
  0x21   : > { %p1314_p7 = scmp.lt.s32.totalorder %s1305_s13, %s1305_s13 }
  0x22   : > { %p2048_p12 = pneg %p1740_p11 }
  0x23   : > { %p1315_p2 = por %p1314_p7, %p1313_p5 }
  0x24   : > { %p1308_p0 = pnand %p1306_p13, %p2048_p12 }
  0x26   : > { %p1309_p3 = pneg %p1308_p0 }
  0x28   : > { %p1316_p10 = pnand %p1315_p2, %p1309_p3 }
  0x2a   : > { %1319 = shalt.err (!%p1316_p10)
}
  0x2b   : > { %s2036_s14 = smov 128   ;;  %s2038_s15 = smov 8  }
  0x2c   : > { %s2067_s3 = sld [smem:[#allocation30_spill]]  ;;  %p50_p2 = scmp.ge.s32.totalorder %s48_s12, 2 }
  0x2d   : > { %s57_s13 = sadd.s32 1, %s1592_s19  ;;  %p64_p9 = scmp.ne.s32.totalorder %s1592_s19, %s1588_s18 }
  0x2e   : > { %p65_p10 = scmp.eq.s32.totalorder %s1604_s22, 0  ;;  %s2106_s12 = smov (%p50_p2, %s48_s12), 0 }
  0x2f   : > { %2068 = sst [smem:[#allocation27_spill]] %s2106_s12  ;;  %p2069_p0 = scmp.eq.s32.totalorder %s1710_s23, 1 }
  0x30   : > { %p66_p13 = por %p65_p10, %p64_p9  ;;  %s52_s26 = ssub.s32 %s1600_s21, %s2106_s12 }
  0x31   : > { %p1766_p3 = por %p2069_p0, %p64_p9  ;;  %p1234_p5 = scmp.lt.s32.totalorder %s1604_s22, 2 }
  0x32   : > { %1204 = dma.hbm_to_vmem [thread:$0]  (!%p1740_p11), %s2067_s3, 512, %s360_s29, [#allocation9], %s2036_s14, %s2036_s14, %s2038_s15  }
  0x33   : > { %s2070_s24 = scalar_select %p1766_p3, 1, 0 }
  0x34   : > { %p55_p7 = scmp.eq.s32.totalorder %s52_s26, 0  ;;  %s2042_s17 = sand.u32 1, %s1592_s19  }
  0x35   : > { %s1776_s29 = sshll.u32 %s2042_s17, 3  ;;  %s1779_s16 = sshll.u32 %s1600_s21, 7 }
  0x36   : > { %s1782_s28 = scalar_select %p55_p7, %s1592_s19, %s57_s13  }
  0x37   : > { %p1784_p2 = pnand %p1234_p5, %p66_p13  ;;  %s427_s15 = sand.u32 1, %s1604_s22  }
  0x38   : > { %2071 = sst [smem:[#allocation28_spill]] %s1782_s28  ;;  %s431_s11 = scalar_lea.vmem [#allocation5], %s1776_s29 }
  0x39   : > { %s2073_s1 = sld [smem:[#allocation29_spill]]  ;;  %s439_s17 = sshll.u32 %s431_s11, 4  ;;  %s440_s17 = int_to_ptr.vmem [resolvable:$true] %s439_s17 }
  0x3a   : > { %s1609_s8 = smov [#allocation10]   ;;  %s1794_s9 = scalar_lea.sflag [#allocation6], %s427_s15 }
  0x3b   : > { %s372_s21 = sshll.u32 %s1609_s8, 4  ;;  %p2049_p9 = pneg %p1784_p2  ;;  %s373_s21 = int_to_ptr.vmem [resolvable:$true] %s372_s21 }
  0x3c   : > { %s1333_s13 = scalar_lea.vmem %s440_s17, 128  ;;  %s1610_s28 = smov [#allocation5]  }
  0x3d   : > { %p1334_p10 = scmp.ne.s32.totalorder %s440_s17, %s1333_s13  ;;  %s1338_s22 = sshll.u32 %s1610_s28, 4  ;;  %s1339_s22 = int_to_ptr.vmem [resolvable:$false] %s1338_s22 }
  0x3e   : > { %s1340_s3 = scalar_lea.vmem %s1339_s22, 256  ;;  %p1341_p5 = scmp.lt.s32.totalorder %s440_s17, %s1339_s22 }
  0x3f   : > { %s437_s26 = scalar_lea.hbm %s2073_s1, %s1779_s16  ;;  %p1336_p13 = pnand %p1334_p10, %p2049_p9 }
  0x40   : > { %p1342_p7 = scmp.lt.s32.totalorder %s1340_s3, %s1333_s13 }
  0x41   : > { %p1337_p0 = pneg %p1336_p13 }
  0x42   : > { %p1343_p1 = por %p1342_p7, %p1341_p5 }
  0x44   : > { %p1344_p12 = pnand %p1343_p1, %p1337_p0 }
  0x46   : > { %1347 = shalt.err (!%p1344_p12)
}
  0x47   : > { %1217 = dma.hbm_to_vmem [thread:$0]  (!%p1784_p2), %s437_s26, 128, %s440_s17, %s1794_s9  }
  0x48   : > { %s1359_s8 = scalar_lea.vmem %s373_s21, 512  ;;  %p2074_p10 = pneg %p1740_p11 }
  0x49   : > { %p1360_p6 = scmp.ne.s32.totalorder %s373_s21, %s1359_s8  ;;  %p1367_p3 = scmp.lt.s32.totalorder %s373_s21, %s373_s21 }
  0x4a   : > { %p1368_p4 = scmp.lt.s32.totalorder %s1359_s8, %s1359_s8 }
  0x4b   : > { %p1362_p13 = pnand %p1360_p6, %p2074_p10 }
  0x4c   : > { %p1369_p8 = por %p1368_p4, %p1367_p3 }
  0x4d   : > { %p1363_p9 = pneg %p1362_p13 }
  0x4f   : > { %p1370_p5 = pnand %p1369_p8, %p1363_p9 }
  0x51   : > { %1373 = shalt.err (!%p1370_p5)
}
  0x52   : > { %s2075_s11 = smov 8   ;;  %s2076_s22 = smov 128  }
  0x53   : > { %s2077_s4 = sld [smem:[#allocation31_spill]]  ;;  %s1611_s17 = smov [#allocation11]  }
  0x54   : > { %s385_s28 = sshll.u32 %s1611_s17, 4  ;;  %p2078_p6 = pmov %p2074_p10  ;;  %s386_s28 = int_to_ptr.vmem [resolvable:$true] %s385_s28 }
  0x55   : > { %s1385_s26 = scalar_lea.vmem %s386_s28, 512  ;;  %p1393_p12 = scmp.lt.s32.totalorder %s386_s28, %s386_s28 }
  0x56   : > { %p1386_p1 = scmp.ne.s32.totalorder %s386_s28, %s1385_s26  ;;  %p1394_p3 = scmp.lt.s32.totalorder %s1385_s26, %s1385_s26 }
  0x58   : > { %p1388_p4 = pnand %p1386_p1, %p2078_p6  ;;  %p1395_p9 = por %p1394_p3, %p1393_p12 }
  0x59   : > { %1207 = dma.hbm_to_vmem [thread:$0]  (!%p1740_p11), %s2077_s4, 512, %s373_s21, [#allocation9], %s2076_s22, %s2076_s22, %s2075_s11  }
  0x5a   : > { %p1389_p8 = pneg %p1388_p4 }
  0x5c   : > { %p1396_p0 = pnand %p1395_p9, %p1389_p8 }
  0x5e   : > { %1399 = shalt.err (!%p1396_p0)
}
  0x5f   : > { %1210 = dma.hbm_to_vmem [thread:$0]  (!%p1740_p11), %s2026_s5, 512, %s386_s28, [#allocation12], %s2076_s22, %s2076_s22, %s2075_s11  }
  0x60   : > { %s418_s12 = scalar_lea.hbm %s2021_s0, %s1779_s16  ;;  %s412_s15 = scalar_lea.vmem [#allocation2], %s1776_s29 }
  0x61   : > { %s420_s17 = sshll.u32 %s412_s15, 4  ;;  %s2079_s26 = sand.u32 1, %s1592_s19   ;;  %s421_s17 = int_to_ptr.vmem [resolvable:$true] %s420_s17 }
  0x62   : > { %s409_s30 = scalar_lea.sflag [#allocation3], %s2079_s26  ;;  %s1413_s1 = scalar_lea.vmem %s421_s17, 128 }
  0x63   : > { %p1414_p7 = scmp.ne.s32.totalorder %s421_s17, %s1413_s1  ;;  %p2080_p10 = pneg %p1784_p2 }
  0x64   : > { %s1612_s21 = smov [#allocation2]  }
  0x65   : > { %p1416_p13 = pnand %p1414_p7, %p2080_p10  ;;  %s1418_s13 = sshll.u32 %s1612_s21, 4  ;;  %s1419_s13 = int_to_ptr.vmem [resolvable:$false] %s1418_s13 }
  0x66   : > { %s1420_s4 = scalar_lea.vmem %s1419_s13, 256  ;;  %p1421_p11 = scmp.lt.s32.totalorder %s421_s17, %s1419_s13 }
  0x67   : > { %p1417_p5 = pneg %p1416_p13  ;;  %p1422_p1 = scmp.lt.s32.totalorder %s1420_s4, %s1413_s1 }
  0x69   : > { %p1423_p6 = por %p1422_p1, %p1421_p11 }
  0x6b   : > { %p1424_p4 = pnand %p1423_p6, %p1417_p5 }
  0x6d   : > { %1427 = shalt.err (!%p1424_p4)
}
  0x6e   : > { %1214 = dma.hbm_to_vmem [thread:$0]  (!%p1784_p2), %s418_s12, 128, %s421_s17, %s409_s30  }
  0x6f   : > { %s456_s28 = scalar_lea.hbm %s2023_s2, %s1779_s16  ;;  %s450_s3 = scalar_lea.vmem [#allocation7], %s1776_s29 }
  0x70   : > { %s458_s8 = sshll.u32 %s450_s3, 4  ;;  %p2081_p12 = pmov %p2080_p10  ;;  %s459_s8 = int_to_ptr.vmem [resolvable:$true] %s458_s8 }
  0x71   : > { %s1441_s15 = scalar_lea.vmem %s459_s8, 128  ;;  %s1613_s1 = smov [#allocation7]  }
  0x72   : > { %p1442_p8 = scmp.ne.s32.totalorder %s459_s8, %s1441_s15  ;;  %s1446_s4 = sshll.u32 %s1613_s1, 4  ;;  %s1447_s4 = int_to_ptr.vmem [resolvable:$false] %s1446_s4 }
  0x73   : > { %s1448_s26 = scalar_lea.vmem %s1447_s4, 256  ;;  %p1449_p0 = scmp.lt.s32.totalorder %s459_s8, %s1447_s4 }
  0x74   : > { %p1444_p3 = pnand %p1442_p8, %p2081_p12  ;;  %p1450_p7 = scmp.lt.s32.totalorder %s1448_s26, %s1441_s15 }
  0x76   : > { %p1445_p9 = pneg %p1444_p3  ;;  %p1451_p10 = por %p1450_p7, %p1449_p0 }
  0x78   : > { %p1452_p13 = pnand %p1451_p10, %p1445_p9 }
  0x7a   : > { %1455 = shalt.err (!%p1452_p13)
}
  0x7b   : > { %1220 = dma.hbm_to_vmem [thread:$0]  (!%p1784_p2), %s456_s28, 128, %s459_s8, %s1794_s9  }
  0x7c   : > { %p2082_p5 = scmp.ne.s32.totalorder %s2065_s27, 0 }
  0x7d   : > { %s1852_s29 = sand.u32 (!%p2082_p5), 1, %s1588_s18   ;;  %p2083_p11 = scmp.ne.s32.totalorder (!%p2082_p5), %s2062_s25, 0 }
  0x7e   : > { %467 = sbr.rel (%p2082_p5) target bundleno = 412 (0x19c), region = 56  ;;  %s1855_s16 = sshll.u32 (!%p2082_p5), %s1852_s29, 3 }
  0x7f   : > { %s470_s12 = scalar_lea.sflag (!%p2082_p5), [#allocation3], %s1852_s29  ;;  %s473_s17 = scalar_lea.vmem (!%p2082_p5), [#allocation2], %s1855_s16 }
  0x83   : > { %1559 = dma.done.wait (%p2083_p11), %s470_s12, 128  }
  0x84   : > { %1561 = vsyncadd (%p2083_p11), %s470_s12, 4294967168  ;;  %s478_s9 = sand.u32 1, %s1710_s23   ;;  %s482_s14 = scalar_lea.vmem [#allocation5], %s1855_s16 }
  0x85   : > { %s479_s27 = scalar_lea.sflag [#allocation6], %s478_s9 }
  0x86   : > { %1563 = dma.done.wait (%p2083_p11), %s479_s27, 256  }
  0x87   : > { %1565 = vsyncadd (%p2083_p11), %s479_s27, 4294967040  ;;  %s491_s30 = scalar_lea.vmem [#allocation7], %s1855_s16  ;;  %p2084_p2 = scmp.eq.s32.totalorder %s1710_s23, 0 }
  0x89   : > { %1567 = dma.done.wait (%p2084_p2), [#allocation9], 1024   ;;  %p2085_p1 = pmov %p2084_p2 }
  0x8b   : > { %1569 = vsyncadd (%p2085_p1), [#allocation9], 4294966272  ;;  %p2086_p6 = pmov %p2085_p1 }
  0x8c   : > { %p2087_p4 = pmov %p2085_p1 }
  0x8d   : > { %1571 = dma.done.wait (%p2086_p6), [#allocation12], 512  }
  0x8e   : > { %1573 = vsyncadd (%p2087_p4), [#allocation12], 4294966784  ;;  %v1614_v0 = vmov 0.0   ;;  %vm1615_vm0 = vmmov 0   ;;  %v566_v1 = vld [vmem:[#allocation8 + $0x18] sm:$0xff]  ;;  %v565_v2 = vld [vmem:[#allocation8 + $0x10] sm:$0xff] }
  0x8f   : > { %1144 = vmatprep.subr.mxu0 %v1614_v0  ;;  %1155 = vmatprep.subr.mxu1 %v1614_v0  ;;  %v653_v3 = vld [vmem:[#allocation10 + $0x18] sm:$0xff]  ;;  %v564_v4 = vld [vmem:[#allocation8 + $0x8] sm:$0xff]  ;;  %v652_v5 = vld [vmem:[#allocation10 + $0x10] sm:$0xff]  ;;  %vm574_vm1 = vcmask 261120   ;;  %s1896_s13 = sshll.u32 %s1596_s20, 7  ;;  %s554_s28 = scalar_lea.vmem [#allocation14], %s1855_s16 }
  0x90   : > { %1152 = vmatprep.mubr.msk.f32.mxu0 %vm1615_vm0, %v1614_v0  ;;  %1163 = vmatprep.mubr.msk.f32.mxu1 %vm1615_vm0, %v1614_v0  ;;  %v651_v6 = vld [vmem:[#allocation10 + $0x8] sm:$0xff]  ;;  %v563_v7 = vld [vmem:[#allocation8] sm:$0xff]  ;;  %v562_v8 = vld [vmem:[%s473_s17] sm:$0xff]  ;;  %s861_s3 = sshll.u32 %s554_s28, 4  ;;  %s547_s8 = scalar_lea.vmem [#allocation13], %s1855_s16  ;;  %s1909_s3 = int_to_ptr.vmem [resolvable:$true] %s861_s3 }
  0x91   : > { %1145 = vmatpush3.msra.mxu0 %v566_v1  ;;  %1156 = vmatpush3.msra.mxu1 %v653_v3  ;;  %v738_v9 = vld [vmem:[#allocation11 + $0x18] sm:$0xff]  ;;  %v650_v10 = vld [vmem:[#allocation10] sm:$0xff]  ;;  %v737_v12 = vld [vmem:[#allocation11 + $0x10] sm:$0xff]  ;;  %s847_s15 = sshll.u32 %s547_s8, 4  ;;  %s1907_s4 = scalar_lea.hbm %s2031_s10, %s1896_s13  ;;  %s1917_s15 = int_to_ptr.vmem [resolvable:$true] %s847_s15 }
  0x92   : > { %1146 = vmatprep.subr.mxu0 %v1614_v0  ;;  %1157 = vmatprep.subr.mxu1 %v1614_v0  ;;  %v649_v11 = vld [vmem:[%s482_s14] sm:$0xff]  ;;  %v734_v15 = vld [vmem:[%s491_s30] sm:$0xff]  ;;  %s2088_s17 = sld [smem:[#allocation33_spill]]  ;;  %s561_s30 = scalar_lea.vmem [#allocation16], %s1855_s16 }
  0x93   : > { %1147 = vmatpush3.msra.mxu0 %v565_v2  ;;  %1158 = vmatpush3.msra.mxu1 %v652_v5  ;;  %v736_v13 = vld [vmem:[#allocation11 + $0x8] sm:$0xff]  ;;  %v735_v14 = vld [vmem:[#allocation11] sm:$0xff]  ;;  %v1115_v16 = vld [vmem:[%s2027_s6] ss:$0 sm:$0xff]  ;;  %s1924_s25 = sshll.u32 %s561_s30, 4  ;;  %s2090_s22 = sld [smem:[#allocation32_spill]]  ;;  %s876_s25 = int_to_ptr.vmem [resolvable:$true] %s1924_s25 }
  0x94   : > { %1148 = vmatprep.subr.mxu0 %v1614_v0  ;;  %1159 = vmatprep.subr.mxu1 %v1614_v0  ;;  %v1117_v18 = vld [vmem:[%s2028_s7] ss:$0 sm:$0xff]  ;;  %s1931_s1 = scalar_lea.sflag [#allocation15], %s478_s9  ;;  %s1456_s20 = scalar_lea.vmem %s1909_s3, 128 }
  0x95   : > { %1149 = vmatpush3.msra.mxu0 %v564_v4  ;;  %1160 = vmatpush3.msra.mxu1 %v651_v6  ;;  %p1457_p8 = scmp.ne.s32.totalorder %s1909_s3, %s1456_s20  ;;  %p2091_p12 = scmp.ne.s32.totalorder %s2070_s24, 0 }
  0x96   : > { %1150 = vmatprep.subr.mxu0 %v1614_v0  ;;  %1161 = vmatprep.subr.mxu1 %v1614_v0  ;;  %s1616_s26 = smov [#allocation14]  }
  0x97   : > { %1151 = vmatpush3.msra.mxu0 %v563_v7  ;;  %1162 = vmatpush3.msra.mxu1 %v650_v10  ;;  %p1458_p3 = pnand %p1457_p8, %p2091_p12 }
  0x98   : > { %1153 = vmatmul.mubr.msk.f32.vlgmr.msra.gmra.mxu0 %vm574_vm1, %v562_v8  ;;  %1166 = vmatprep.subr.mxu0 %v1614_v0  ;;  %s2089_s27 = smov %s2088_s17  ;;  %s1915_s14 = scalar_lea.hbm %s2088_s17, %s1896_s13 }
  0x99   : > { %1167 = vmatpush3.msra.mxu0 %v738_v9  ;;  %1164 = vmatmul.mubr.msk.f32.vlgmr.msra.gmra.mxu1 %vm574_vm1, %v649_v11  ;;  %v1119_v25 = vld [vmem:[%s2090_s22] ss:$0 sm:$0xff]  ;;  %p1459_p9 = pneg %p1458_p3 }
  0x9a   : > { %1168 = vmatprep.subr.mxu0 %v1614_v0  ;;  %1174 = vmatprep.mubr.msk.f32.mxu0 %vm1615_vm0, %v1614_v0 }
  0x9b   : > { %1169 = vmatpush3.msra.mxu0 %v737_v12 }
  0x9c   : > { %1170 = vmatprep.subr.mxu0 %v1614_v0 }
  0x9d   : > { %1171 = vmatpush3.msra.mxu0 %v736_v13 }
  0x9e   : > { %1172 = vmatprep.subr.mxu0 %v1614_v0 }
  0x9f   : > { %1173 = vmatpush3.msra.mxu0 %v735_v14 }
  0xa0   : > { %1175 = vmatmul.mubr.msk.f32.vlgmr.msra.gmra.mxu0 %vm574_vm1, %v734_v15 }
 0x158   : > { %v644_v17 = vpop.f32.mrf.mxu0 }
 0x159   : > { %v645_v19 = vadd.f32 %v1115_v16, %v644_v17  ;;  %v730_v21 = vpop.f32.mrf.mxu1 }
 0x15a   : > { %v1154_v20 = vpop.f32.mrf.mxu0  ;;  %v731_v23 = vadd.f32 %v1117_v18, %v730_v21 }
 0x15b   : > { %v648_v22 = vmul.f32 0.35355338, %v645_v19  ;;  %v1165_v24 = vpop.f32.mrf.mxu1 }
 0x15c   : > { %820 = vst.msk [vmem:[%s554_s28] sm:$0xff] %vm574_vm1, %v731_v23  ;;  %s1460_s28 = sshll.u32 %s1616_s26, 4  ;;  %s1461_s28 = int_to_ptr.vmem [resolvable:$false] %s1460_s28 }
 0x15d   : > { %819 = vst.msk [vmem:[%s547_s8] sm:$0xff] %vm574_vm1, %v648_v22  ;;  %s1462_s8 = scalar_lea.vmem %s1461_s28, 256  ;;  %p1463_p0 = scmp.lt.s32.totalorder %s1909_s3, %s1461_s28 }
 0x15e   : > { %p1464_p7 = scmp.lt.s32.totalorder %s1462_s8, %s1456_s20 }
 0x160   : > { %p1465_p10 = por %p1464_p7, %p1463_p0 }
 0x162   : > { %p1466_p13 = pnand %p1465_p10, %p1459_p9 }
 0x164   : > { %1469 = shalt.err (!%p1466_p13)
}
 0x165   : > { %s1470_s23 = scalar_lea.hbm %s1907_s4, 128  ;;  %s1474_s17 = scalar_lea.hbm %s2031_s10, 256 }
 0x166   : > { %p1471_p5 = scmp.ne.s32.totalorder %s1907_s4, %s1470_s23  ;;  %p1475_p1 = scmp.lt.s32.totalorder %s1907_s4, %s2031_s10 }
 0x167   : > { %p1476_p6 = scmp.lt.s32.totalorder %s1474_s17, %s1470_s23 }
 0x168   : > { %p1472_p11 = pnand %p1471_p5, %p2091_p12 }
 0x169   : > { %p1477_p4 = por %p1476_p6, %p1475_p1 }
 0x16a   : > { %p1473_p2 = pneg %p1472_p11 }
 0x16c   : > { %p1478_p8 = pnand %p1477_p4, %p1473_p2 }
 0x16e   : > { %1481 = shalt.err (!%p1478_p8)
}
 0x16f   : > { %1196 = dma.vmem_to_hbm [thread:$0]  (%p2091_p12), %s1909_s3, 128, %s1907_s4, %s1931_s1  }
 0x170   : > { %s823_s22 = scalar_lea.sflag [#allocation4], %s1852_s29  ;;  %s1482_s20 = scalar_lea.vmem %s1917_s15, 128 }
 0x171   : > { %p1483_p3 = scmp.ne.s32.totalorder %s1917_s15, %s1482_s20  ;;  %s1617_s26 = smov [#allocation13]  }
 0x172   : > { %s1486_s28 = sshll.u32 %s1617_s26, 4  ;;  %s1487_s28 = int_to_ptr.vmem [resolvable:$false] %s1486_s28 }
 0x173   : > { %p1484_p9 = pnand %p1483_p3, %p2091_p12  ;;  %s1488_s8 = scalar_lea.vmem %s1487_s28, 256 }
 0x174   : > { %p1489_p7 = scmp.lt.s32.totalorder %s1917_s15, %s1487_s28  ;;  %p1490_p10 = scmp.lt.s32.totalorder %s1488_s8, %s1482_s20 }
 0x175   : > { %p1485_p0 = pneg %p1484_p9 }
 0x176   : > { %p1491_p13 = por %p1490_p10, %p1489_p7 }
 0x178   : > { %p1492_p5 = pnand %p1491_p13, %p1485_p0 }
 0x17a   : > { %1495 = shalt.err (!%p1492_p5)
}
 0x17b   : > { %s1496_s3 = scalar_lea.hbm %s1915_s14, 128  ;;  %s1500_s23 = scalar_lea.hbm %s2089_s27, 256 }
 0x17c   : > { %p1497_p11 = scmp.ne.s32.totalorder %s1915_s14, %s1496_s3  ;;  %p1501_p6 = scmp.lt.s32.totalorder %s1915_s14, %s2089_s27 }
 0x17d   : > { %p1502_p4 = scmp.lt.s32.totalorder %s1500_s23, %s1496_s3 }
 0x17e   : > { %p1498_p2 = pnand %p1497_p11, %p2091_p12 }
 0x17f   : > { %p1503_p8 = por %p1502_p4, %p1501_p6 }
 0x180   : > { %p1499_p1 = pneg %p1498_p2 }
 0x182   : > { %p1504_p3 = pnand %p1503_p8, %p1499_p1 }
 0x184   : > { %1507 = shalt.err (!%p1504_p3)
}
 0x185   : > { %1195 = dma.vmem_to_hbm [thread:$0]  (%p2091_p12), %s1917_s15, 128, %s1915_s14, %s823_s22   ;;  %v815_v26 = vpop.f32.mrf.mxu0 }
 0x186   : > { %v816_v27 = vadd.f32 %v1119_v25, %v815_v26  ;;  %s2092_s11 = sld [smem:[#allocation34_spill]]  ;;  %s1508_s26 = scalar_lea.vmem %s876_s25, 128 }
 0x187   : > { %v1176_v28 = vpop.f32.mrf.mxu0  ;;  %p1509_p9 = scmp.ne.s32.totalorder %s876_s25, %s1508_s26  ;;  %s1618_s28 = smov [#allocation16]  }
 0x188   : > { %821 = vst.msk [vmem:[%s561_s30] sm:$0xff] %vm574_vm1, %v816_v27  ;;  %s1512_s8 = sshll.u32 %s1618_s28, 4  ;;  %s1513_s8 = int_to_ptr.vmem [resolvable:$false] %s1512_s8 }
 0x189   : > { %p1510_p0 = pnand %p1509_p9, %p2091_p12  ;;  %s1514_s15 = scalar_lea.vmem %s1513_s8, 256 }
 0x18a   : > { %p1515_p10 = scmp.lt.s32.totalorder %s876_s25, %s1513_s8  ;;  %p1516_p13 = scmp.lt.s32.totalorder %s1514_s15, %s1508_s26 }
 0x18b   : > { %p1511_p7 = pneg %p1510_p0 }
 0x18c   : > { %s873_s20 = scalar_lea.hbm %s2092_s11, %s1896_s13  ;;  %p1517_p5 = por %p1516_p13, %p1515_p10 }
 0x18e   : > { %p1518_p11 = pnand %p1517_p5, %p1511_p7 }
 0x190   : > { %1521 = shalt.err (!%p1518_p11)
}
 0x191   : > { %s1522_s13 = scalar_lea.hbm %s873_s20, 128  ;;  %s1526_s30 = scalar_lea.hbm %s2092_s11, 256 }
 0x192   : > { %p1523_p2 = scmp.ne.s32.totalorder %s873_s20, %s1522_s13  ;;  %p1527_p4 = scmp.lt.s32.totalorder %s873_s20, %s2092_s11 }
 0x193   : > { %p1528_p8 = scmp.lt.s32.totalorder %s1526_s30, %s1522_s13 }
 0x194   : > { %p1524_p1 = pnand %p1523_p2, %p2091_p12 }
 0x195   : > { %p1529_p3 = por %p1528_p8, %p1527_p4 }
 0x196   : > { %p1525_p6 = pneg %p1524_p1 }
 0x198   : > { %p1530_p9 = pnand %p1529_p3, %p1525_p6 }
 0x19a   : > { %1533 = shalt.err (!%p1530_p9)
}
 0x19b   : > { %1197 = dma.vmem_to_hbm [thread:$0]  (%p2091_p12), %s876_s25, 128, %s873_s20, %s1931_s1  }
 0x19c PF: > { %s2093_s29 = sld [smem:[#allocation23_spill]] }
 0x19d   : > { %s2094_s4 = sld [smem:[#allocation26_spill]] }
 0x19e   : > { %s2095_s23 = sld [smem:[#allocation25_spill]] }
 0x1a2   : > { %s887_s9 = sand.u32 1, %s2093_s29  }
 0x1a3   : > { %p2096_p0 = scmp.ne.s32.totalorder %s2094_s4, 0  ;;  %s888_s12 = scalar_lea.sflag [#allocation4], %s887_s9 }
 0x1a4   : > { %p2097_p7 = scmp.ge.s32.totalorder %s2095_s23, 2 }
 0x1a6   : > { %p1222_p10 = pnand %p2097_p7, %p2096_p0 }
 0x1a8   : > { %p1223_p13 = pneg %p1222_p10 }
 0x1aa   : > { %1575 = dma.done.wait (%p1223_p13), %s888_s12, 128  }
 0x1ab   : > { %1577 = vsyncadd (%p1223_p13), %s888_s12, 4294967168  ;;  %s2098_s17 = sadd.s32 4294967294, %s2095_s23  }
 0x1ac   : > { %s896_s21 = sand.u32 1, %s2098_s17  }
 0x1ad   : > { %s897_s26 = scalar_lea.sflag [#allocation15], %s896_s21 }
 0x1ae   : > { %1579 = dma.done.wait (%p1223_p13), %s897_s26, 256  }
 0x1af   : > { %1581 = vsyncadd (%p1223_p13), %s897_s26, 4294967040  ;;  %s36_s22 = sadd.s32 1, %s2095_s23   ;;  %s2099_s24 = sld [smem:[#allocation28_spill]] }
 0x1b0   : > { %p33_p12 = scmp.ge.s32.totalorder %s36_s22, 4   ;;  %s2100_s20 = sld [smem:[#allocation24_spill]] }
 0x1b1   : > { %s2101_s21 = sld [smem:[#allocation27_spill]]  ;;  %s2102_s17 = smov %s1588_s18 }
 0x1b2   : > { %s2103_s18 = smov %s1592_s19  ;;  %35 = sbr.rel (!%p33_p12) target bundleno = 19 (0x13), region = 169 }
 0x1b5   : > { %s2104_s19 = smov %s2099_s24 }
 0x1b7   :  { %911 = vsyncpa [#allocation3], 1 }
 0x1b8   :  { %913 = vsyncpa [#allocation3 + $0x1], 1 }
 0x1b9   :  { %914 = vsyncpa [#allocation6], 1 }
 0x1ba   :  { %916 = vsyncpa [#allocation6 + $0x1], 1 }
 0x1bb   :  { %917 = vsyncpa [#allocation9], 1 }
 0x1bc   :  { %918 = vsyncpa [#allocation12], 1 }
 0x1bd   :  { %919 = vsyncpa [#allocation4], 1 }
 0x1be   :  { %921 = vsyncpa [#allocation4 + $0x1], 1 }
 0x1bf   :  { %922 = vsyncpa [#allocation15], 1 }
 0x1c0   :  { %924 = vsyncpa [#allocation15 + $0x1], 1 }

</bundles_post_ra>
